<compile_context>
chip_gen: v5e
topology: v5e:2x2
jax: 0.10.0
libtpu: 0.0.40
codegen_flags: <defaults>
</compile_context>

<pallas_src>
import functools

import jax
import jax.numpy as jnp
from jax.experimental import pallas as pl
from jax.experimental.pallas import tpu as pltpu

LRELU_SLOPE = 0.1  # hps.lrelu_slope in HiFi-GAN


def get_padding(kernel_size, dilation=1):
    return int((kernel_size * dilation - dilation) / 2)


def _round_up(x, m):
    return ((x + m - 1) // m) * m


def _cdiv(a, b):
    return (a + b - 1) // b


# ----------------------------------------------------------------------------- kernel
def _conv_kernel(x_ref, w_ref, b_ref, o_ref, *, taps, th, tg, n_h, slope, merge_m):
    """One (G-block, Cout-tile, H-tile) output block of a (K,1)-conv.

    x_ref : (tg, Hq, crp)  bf16  stride-grouped activations (VMEM-resident across
                                 the Cout / Hout grid axes)
    w_ref : (R, tn)        bf16  flattened weight tile (R = D * crp)
    b_ref : (1, tn)        f32   bias tile
    o_ref : (tg, th, tn)         output tile
    taps  : tuple of (row_offset d, contraction width, weight row offset)
    """
    if n_h == 1:
        row0 = 0                                            # fully static slicing
    else:
        row0 = pl.multiple_of(pl.program_id(2) * th, th)    # aligned dynamic start

    def accumulate(load_lhs):
        acc = None
        for (d, width, woff) in taps:
            lhs = load_lhs(d, width)                        # (..., width) bf16
            contrib = jnp.dot(lhs, w_ref[woff:woff + width, :],
                              preferred_element_type=jnp.float32)
            acc = contrib if acc is None else acc + contrib  # value accumulation
        return acc

    def epilogue(y):
        y = y + b_ref[...]
        if slope is not None:
            y = jnp.maximum(y, y * slope)                   # leaky_relu, no cmp+select
        return y.astype(o_ref.dtype)

    if merge_m:
        # Contraction widths are 128-aligned: fold the tg columns into the matmul
        # M dimension (one big dot per tap, M = tg*th).
        y = accumulate(
            lambda d, width: x_ref[:, pl.ds(row0 + d, th), :width]
            .reshape(tg * th, width))
        o_ref[...] = epilogue(y).reshape(tg, th, o_ref.shape[-1])
    else:
        # Shallow layers (contraction width not lane-aligned): one dot chain per
        # column; th is large there so M = th is already MXU-friendly.
        for t in range(tg):
            y = accumulate(lambda d, width: x_ref[t, pl.ds(row0 + d, th), :width])
            o_ref[t, :, :] = epilogue(y)


# ----------------------------------------------------------------------------- conv layer
def conv_kx1(x, w, b, *, stride, padding, slope, out_dtype=jnp.bfloat16,
             th_cap=256, acc_budget=384 * 1024, slab_budget=4 * 1024 * 1024):
    """Conv2d with kernel (K,1) / stride (S,1) / zero padding (P,0) on a
    column-major activation layout, fused with bias + optional leaky_relu.

    x: (G, H, Cin) with G = batch*period (independent columns), f32 or bf16
    w: (K, Cin, Cout)   NOTE: real PyTorch weights are (Cout, Cin, K, 1); after the
                        weight_norm g*v/||v|| recombination they must be permuted
                        (2, 1, 0) to this layout.
    b: (Cout,)
    returns (G, Hout, Cout) in out_dtype
    """
    G, H, Cin = x.shape
    K, wc, Cout = w.shape
    assert wc == Cin
    S, P = stride, padding

    Hp = H + 2 * P
    Hout = (Hp - K) // S + 1
    assert Hout >= 1

    # ---- tile geometry -------------------------------------------------------
    D = (K - 1) // S + 1                    # distinct reshaped-row offsets per output
    cr = S * Cin                            # channels after stride-grouping
    crp = _round_up(cr, 8)
    cout_p = _round_up(Cout, 128)           # lane-dense stores
    if cout_p % 512 == 0:
        tn = 512
    elif cout_p % 256 == 0:
        tn = 256
    else:
        tn = 128
    n_n = cout_p // tn

    n_h = _cdiv(Hout, th_cap)
    th = _round_up(_cdiv(Hout, n_h), 16)    # multiple of 16 (bf16 sublane packing)
    n_h = _cdiv(Hout, th)
    Hout_pad = n_h * th                     # hugs Hout (< th slack)
    Hq = Hout_pad + D - 1                   # reshaped rows needed per column

    taps = []
    for d in range(D):
        s_d = min(S, K - d * S)
        taps.append((d, _round_up(s_d * Cin, 8), d * crp))
    merge_m = all(width % 128 == 0 for (_, width, _) in taps)

    # tg columns per grid step: bound the f32 accumulator and the VMEM slab.
    tg = max(1, acc_budget // (th * tn * 4))
    tg = min(tg, max(1, slab_budget // (Hq * crp * 2)))
    tg = min(tg, 32 if merge_m else 8, G)
    n_g = _cdiv(G, tg)
    tg = _cdiv(G, n_g)
    G_pad = n_g * tg

    # ---- operand prep (reshape/pad only; no transposes) ----------------------
    # TODO(synk): for extremely long clips the per-column slab should be H-blocked;
    # here it is kept whole (fine for normal audio lengths).
    back = Hq * S - H - P
    xg = jnp.pad(x, ((0, G_pad - G), (P, back), (0, 0)))
    xr = xg.reshape(G_pad, Hq, cr)                       # free stride-grouping reshape
    if crp != cr:
        xr = jnp.pad(xr, ((0, 0), (0, 0), (0, crp - cr)))
    xr = xr.astype(jnp.bfloat16)

    R = D * crp
    blocks = []
    for d in range(D):
        s_d = min(S, K - d * S)
        blk = w[d * S:d * S + s_d].reshape(s_d * Cin, Cout)   # tap-major within block
        blocks.append(jnp.pad(blk, ((0, crp - s_d * Cin), (0, 0))))
    w_flat = jnp.concatenate(blocks, axis=0)                  # (R, Cout)
    w_flat = jnp.pad(w_flat, ((0, 0), (0, cout_p - Cout))).astype(jnp.bfloat16)
    b_p = jnp.pad(b.astype(jnp.float32), (0, cout_p - Cout)).reshape(1, cout_p)

    # ---- VMEM budget / cost (unpadded work) -----------------------------------
    lhs_max = max(width for (_, width, _) in taps)
    slab_bytes = tg * Hq * crp * 2
    w_bytes = R * tn * 2
    out_bytes = tg * th * tn * jnp.dtype(out_dtype).itemsize
    acc_bytes = tg * th * tn * 4
    lhs_bytes = tg * th * lhs_max * 2
    vmem_need = 2 * (slab_bytes + w_bytes + out_bytes + lhs_bytes) + 2 * acc_bytes
    vmem_limit = int(min(max(vmem_need + (4 << 20), 16 << 20), 48 << 20))

    flops = 2 * G * Hout * K * Cin * Cout
    bytes_accessed = (G_pad * Hq * crp * 2 + R * cout_p * 2 * n_g
                      + G_pad * Hout_pad * cout_p * jnp.dtype(out_dtype).itemsize
                      + cout_p * 4)

    out = pl.pallas_call(
        functools.partial(_conv_kernel, taps=tuple(taps), th=th, tg=tg,
                          n_h=n_h, slope=slope, merge_m=merge_m),
        out_shape=jax.ShapeDtypeStruct((G_pad, Hout_pad, cout_p), out_dtype),
        grid=(n_g, n_n, n_h),
        in_specs=[
            # per-G-block slab, resident across the Cout / Hout axes
            pl.BlockSpec((tg, Hq, crp), lambda g, j, i: (g, 0, 0)),
            pl.BlockSpec((R, tn), lambda g, j, i: (0, j)),
            pl.BlockSpec((1, tn), lambda g, j, i: (0, j)),
        ],
        out_specs=pl.BlockSpec((tg, th, tn), lambda g, j, i: (g, i, j)),
        compiler_params=pltpu.CompilerParams(
            dimension_semantics=("parallel", "parallel", "parallel"),
            vmem_limit_bytes=vmem_limit,
        ),
        cost_estimate=pl.CostEstimate(
            flops=flops, transcendentals=0, bytes_accessed=bytes_accessed),
    )(xr, w_flat, b_p)

    return out[:G, :Hout, :Cout]                         # drop G/H/Cout padding


# ----------------------------------------------------------------------------- module
# (Cin, Cout, K, stride, pad) for self.convs, then conv_post.
_CONV_CFG = [
    (1, 32, 5, 3, get_padding(5, 1)),
    (32, 128, 5, 3, get_padding(5, 1)),
    (128, 512, 5, 3, get_padding(5, 1)),
    (512, 1024, 5, 3, get_padding(5, 1)),
    (1024, 1024, 5, 1, 2),
]
_POST_CFG = (1024, 1, 3, 1, 1)


def init_params(key):
    """Deterministic synthetic parameters.  weight_norm at init is identity
    (g = ||v||), so raw weights are used directly.  Layout is (K, Cin, Cout)."""
    params = {"convs": [], "conv_post": None}
    for (cin, cout, k, _, _) in _CONV_CFG:
        key, kw, kb = jax.random.split(key, 3)
        scale = 1.0 / jnp.sqrt(jnp.float32(cin * k))
        wgt = jax.random.normal(kw, (k, cin, cout), jnp.float32) * scale
        bia = jax.random.normal(kb, (cout,), jnp.float32) * 0.01
        params["convs"].append((wgt, bia))
    cin, cout, k, _, _ = _POST_CFG
    key, kw, kb = jax.random.split(key, 3)
    scale = 1.0 / jnp.sqrt(jnp.float32(cin * k))
    params["conv_post"] = (jax.random.normal(kw, (k, cin, cout), jnp.float32) * scale,
                           jax.random.normal(kb, (cout,), jnp.float32) * 0.01)
    return params


def discriminator_p_forward(x, params, period):
    """x: (B, 1, T) f32.  Returns (flat logits f32 (B, H'*period), fmap).

    fmap entries are (B, period, H', C) -- the values of the PyTorch NCHW feature
    maps with the (0, 3, 2, 1) permutation deferred to the consumer (bf16, except
    the f32 conv_post map)."""
    B, C, T = x.shape
    if T % period != 0:
        n_pad = period - T % period
        x = jnp.pad(x, ((0, 0), (0, 0), (0, n_pad)), mode="reflect")
        T = T + n_pad
    H, W = T // period, period
    # (B, 1, H, W) NCHW -> column-major (G = B*W, H, Cin=1)
    xg = jnp.transpose(x.reshape(B, H, W), (0, 2, 1)).reshape(B * W, H, 1)

    fmap = []
    for (wgt, bia), (_, _, _, stride, pad) in zip(params["convs"], _CONV_CFG):
        xg = conv_kx1(xg, wgt, bia, stride=stride, padding=pad, slope=LRELU_SLOPE)
        fmap.append(xg.reshape(B, W, xg.shape[1], xg.shape[2]))

    wgt, bia = params["conv_post"]
    _, _, _, stride, pad = _POST_CFG
    xg = conv_kx1(xg, wgt, bia, stride=stride, padding=pad, slope=None,
                  out_dtype=jnp.float32)
    fmap.append(xg.reshape(B, W, xg.shape[1], xg.shape[2]))

    # torch.flatten(x, 1, -1) on NCHW (B, 1, H', W): order (h, w).
    Hf = xg.shape[1]
    out = jnp.transpose(xg.reshape(B, W, Hf), (0, 2, 1)).reshape(B, Hf * W)
    return out.astype(jnp.float32), fmap


# ----------------------------------------------------------------------------- reference
def _ref_forward(x, params, period):
    """Pure-JAX f32 reference of the same forward pass (for a tolerance check)."""
    B, C, T = x.shape
    if T % period != 0:
        n_pad = period - T % period
        x = jnp.pad(x, ((0, 0), (0, 0), (0, n_pad)), mode="reflect")
        T = T + n_pad
    H, W = T // period, period
    xg = jnp.transpose(x.reshape(B, H, W), (0, 2, 1)).reshape(B * W, H, 1)

    def ref_conv(xc, wgt, bia, stride, pad, slope):
        K = wgt.shape[0]
        xp = jnp.pad(xc, ((0, 0), (pad, pad), (0, 0)))
        Hout = (xc.shape[1] + 2 * pad - K) // stride + 1
        y = jnp.zeros((xc.shape[0], Hout, wgt.shape[2]), jnp.float32)
        for k in range(K):
            xs = xp[:, k:k + stride * (Hout - 1) + 1:stride, :]
            y = y + jnp.einsum("ghc,co->gho", xs.astype(jnp.float32),
                               wgt[k].astype(jnp.float32))
        y = y + bia.astype(jnp.float32)
        if slope is not None:
            y = jnp.maximum(y, slope * y)
        return y

    for (wgt, bia), (_, _, _, stride, pad) in zip(params["convs"], _CONV_CFG):
        xg = ref_conv(xg, wgt, bia, stride, pad, LRELU_SLOPE)
    wgt, bia = params["conv_post"]
    _, _, _, stride, pad = _POST_CFG
    xg = ref_conv(xg, wgt, bia, stride, pad, None)
    Hf = xg.shape[1]
    return jnp.transpose(xg.reshape(B, W, Hf), (0, 2, 1)).reshape(B, Hf * W)


# ----------------------------------------------------------------------------- main
if __name__ == "__main__":
    key = jax.random.PRNGKey(0)
    k_param, k_x = jax.random.split(key)

    period = 3                       # 16 % 3 != 0 -> exercises the reflect-pad branch
    B, C, T = 2, 1, 16
    x = jax.random.normal(k_x, (B, C, T), jnp.float32)

    params = init_params(k_param)

    out, fmap = discriminator_p_forward(x, params, period)
    out = jax.block_until_ready(out)
    fmap = [jax.block_until_ready(f) for f in fmap]

    assert out.ndim == 2 and out.shape[0] == B
    assert len(fmap) == 6
    assert bool(jnp.all(jnp.isfinite(out)))

    ref = jax.block_until_ready(_ref_forward(x, params, period))
    err = float(jnp.max(jnp.abs(out - ref)))
    assert err < 0.1, f"max abs err vs f32 reference: {err}"   # bf16 tolerance

    print("KERNEL_OK")
</pallas_src>

<mosaic_0001>
module attributes {stable_mosaic.version = 11 : i64} {
  func.func @_conv_kernel(%arg0: i32, %arg1: i32, %arg2: i32, %arg3: memref<6x17x8xbf16, #tpu.memory_space<vmem>>, %arg4: memref<16x128xbf16, #tpu.memory_space<vmem>>, %arg5: memref<1x128xf32, #tpu.memory_space<vmem>>, %arg6: memref<6x16x128xbf16, #tpu.memory_space<vmem>>) attributes {dimension_semantics = [#tpu.dimension_semantics<parallel>, #tpu.dimension_semantics<parallel>, #tpu.dimension_semantics<parallel>], iteration_bounds = array<i64: 1, 1, 1>, scalar_prefetch = 0 : i64, scratch_operands = 0 : i64, tpu.core_type = #tpu.core_type<tc>, window_params = [{transform_indices = @transform_0, window_bounds = array<i64: 6, 17, 8>}, {transform_indices = @transform_1, window_bounds = array<i64: 16, 128>}, {transform_indices = @transform_2, window_bounds = array<i64: 1, 128>}, {transform_indices = @transform_3, window_bounds = array<i64: 6, 16, 128>}]} {
    %c0 = arith.constant 0 : index
    %c0_0 = arith.constant 0 : index
    %c0_1 = arith.constant 0 : index
    %0 = vector.load %arg3[%c0, %c0_0, %c0_1] : memref<6x17x8xbf16, #tpu.memory_space<vmem>>, vector<1x16x8xbf16>
    %1 = vector.shape_cast %0 : vector<1x16x8xbf16> to vector<16x8xbf16>
    %c0_2 = arith.constant 0 : index
    %c0_3 = arith.constant 0 : index
    %2 = vector.load %arg4[%c0_2, %c0_3] : memref<16x128xbf16, #tpu.memory_space<vmem>>, vector<8x128xbf16>
    %cst = arith.constant dense<0.000000e+00> : vector<16x128xf32>
    %3 = tpu.matmul %1, %2, %cst {dimension_numbers = #tpu.dot_dimension_numbers<[1], [0], [0], [1], [0, 0, 1, 1], [], []>} : vector<16x8xbf16>, vector<8x128xbf16>, vector<16x128xf32> -> vector<16x128xf32>
    %c0_4 = arith.constant 0 : index
    %c1 = arith.constant 1 : index
    %c0_5 = arith.constant 0 : index
    %4 = vector.load %arg3[%c0_4, %c1, %c0_5] : memref<6x17x8xbf16, #tpu.memory_space<vmem>>, vector<1x16x8xbf16>
    %5 = vector.shape_cast %4 : vector<1x16x8xbf16> to vector<16x8xbf16>
    %c8 = arith.constant 8 : index
    %c0_6 = arith.constant 0 : index
    %6 = vector.load %arg4[%c8, %c0_6] : memref<16x128xbf16, #tpu.memory_space<vmem>>, vector<8x128xbf16>
    %cst_7 = arith.constant dense<0.000000e+00> : vector<16x128xf32>
    %7 = tpu.matmul %5, %6, %cst_7 {dimension_numbers = #tpu.dot_dimension_numbers<[1], [0], [0], [1], [0, 0, 1, 1], [], []>} : vector<16x8xbf16>, vector<8x128xbf16>, vector<16x128xf32> -> vector<16x128xf32>
    %8 = arith.addf %3, %7 : vector<16x128xf32>
    %c0_8 = arith.constant 0 : index
    %c0_9 = arith.constant 0 : index
    %9 = vector.load %arg5[%c0_8, %c0_9] : memref<1x128xf32, #tpu.memory_space<vmem>>, vector<1x128xf32>
    %10 = vector.broadcast %9 : vector<1x128xf32> to vector<16x128xf32>
    %11 = arith.addf %8, %10 : vector<16x128xf32>
    %cst_10 = arith.constant 1.000000e-01 : f32
    %12 = vector.broadcast %cst_10 : f32 to vector<16x128xf32>
    %13 = arith.mulf %11, %12 : vector<16x128xf32>
    %14 = arith.maximumf %11, %13 : vector<16x128xf32>
    %15 = arith.truncf %14 : vector<16x128xf32> to vector<16x128xbf16>
    %c0_11 = arith.constant 0 : index
    %c0_12 = arith.constant 0 : index
    %c0_13 = arith.constant 0 : index
    %16 = vector.load %arg6[%c0_11, %c0_12, %c0_13] : memref<6x16x128xbf16, #tpu.memory_space<vmem>>, vector<1x16x128xbf16>
    %17 = vector.shape_cast %16 : vector<1x16x128xbf16> to vector<16x128xbf16>
    %18 = vector.shape_cast %15 : vector<16x128xbf16> to vector<1x16x128xbf16>
    tpu.vector_store %arg6[%c0_11, %c0_12, %c0_13], %18 {strides = array<i32>} : memref<6x16x128xbf16, #tpu.memory_space<vmem>>, vector<1x16x128xbf16>,
    %c1_14 = arith.constant 1 : index
    %c0_15 = arith.constant 0 : index
    %c0_16 = arith.constant 0 : index
    %19 = vector.load %arg3[%c1_14, %c0_15, %c0_16] : memref<6x17x8xbf16, #tpu.memory_space<vmem>>, vector<1x16x8xbf16>
    %20 = vector.shape_cast %19 : vector<1x16x8xbf16> to vector<16x8xbf16>
    %c0_17 = arith.constant 0 : index
    %c0_18 = arith.constant 0 : index
    %21 = vector.load %arg4[%c0_17, %c0_18] : memref<16x128xbf16, #tpu.memory_space<vmem>>, vector<8x128xbf16>
    %cst_19 = arith.constant dense<0.000000e+00> : vector<16x128xf32>
    %22 = tpu.matmul %20, %21, %cst_19 {dimension_numbers = #tpu.dot_dimension_numbers<[1], [0], [0], [1], [0, 0, 1, 1], [], []>} : vector<16x8xbf16>, vector<8x128xbf16>, vector<16x128xf32> -> vector<16x128xf32>
    %c1_20 = arith.constant 1 : index
    %c1_21 = arith.constant 1 : index
    %c0_22 = arith.constant 0 : index
    %23 = vector.load %arg3[%c1_20, %c1_21, %c0_22] : memref<6x17x8xbf16, #tpu.memory_space<vmem>>, vector<1x16x8xbf16>
    %24 = vector.shape_cast %23 : vector<1x16x8xbf16> to vector<16x8xbf16>
    %c8_23 = arith.constant 8 : index
    %c0_24 = arith.constant 0 : index
    %25 = vector.load %arg4[%c8_23, %c0_24] : memref<16x128xbf16, #tpu.memory_space<vmem>>, vector<8x128xbf16>
    %cst_25 = arith.constant dense<0.000000e+00> : vector<16x128xf32>
    %26 = tpu.matmul %24, %25, %cst_25 {dimension_numbers = #tpu.dot_dimension_numbers<[1], [0], [0], [1], [0, 0, 1, 1], [], []>} : vector<16x8xbf16>, vector<8x128xbf16>, vector<16x128xf32> -> vector<16x128xf32>
    %27 = arith.addf %22, %26 : vector<16x128xf32>
    %c0_26 = arith.constant 0 : index
    %c0_27 = arith.constant 0 : index
    %28 = vector.load %arg5[%c0_26, %c0_27] : memref<1x128xf32, #tpu.memory_space<vmem>>, vector<1x128xf32>
    %29 = vector.broadcast %28 : vector<1x128xf32> to vector<16x128xf32>
    %30 = arith.addf %27, %29 : vector<16x128xf32>
    %cst_28 = arith.constant 1.000000e-01 : f32
    %31 = vector.broadcast %cst_28 : f32 to vector<16x128xf32>
    %32 = arith.mulf %30, %31 : vector<16x128xf32>
    %33 = arith.maximumf %30, %32 : vector<16x128xf32>
    %34 = arith.truncf %33 : vector<16x128xf32> to vector<16x128xbf16>
    %c1_29 = arith.constant 1 : index
    %c0_30 = arith.constant 0 : index
    %c0_31 = arith.constant 0 : index
    %35 = vector.load %arg6[%c1_29, %c0_30, %c0_31] : memref<6x16x128xbf16, #tpu.memory_space<vmem>>, vector<1x16x128xbf16>
    %36 = vector.shape_cast %35 : vector<1x16x128xbf16> to vector<16x128xbf16>
    %37 = vector.shape_cast %34 : vector<16x128xbf16> to vector<1x16x128xbf16>
    tpu.vector_store %arg6[%c1_29, %c0_30, %c0_31], %37 {strides = array<i32>} : memref<6x16x128xbf16, #tpu.memory_space<vmem>>, vector<1x16x128xbf16>,
    %c2 = arith.constant 2 : index
    %c0_32 = arith.constant 0 : index
    %c0_33 = arith.constant 0 : index
    %38 = vector.load %arg3[%c2, %c0_32, %c0_33] : memref<6x17x8xbf16, #tpu.memory_space<vmem>>, vector<1x16x8xbf16>
    %39 = vector.shape_cast %38 : vector<1x16x8xbf16> to vector<16x8xbf16>
    %c0_34 = arith.constant 0 : index
    %c0_35 = arith.constant 0 : index
    %40 = vector.load %arg4[%c0_34, %c0_35] : memref<16x128xbf16, #tpu.memory_space<vmem>>, vector<8x128xbf16>
    %cst_36 = arith.constant dense<0.000000e+00> : vector<16x128xf32>
    %41 = tpu.matmul %39, %40, %cst_36 {dimension_numbers = #tpu.dot_dimension_numbers<[1], [0], [0], [1], [0, 0, 1, 1], [], []>} : vector<16x8xbf16>, vector<8x128xbf16>, vector<16x128xf32> -> vector<16x128xf32>
    %c2_37 = arith.constant 2 : index
    %c1_38 = arith.constant 1 : index
    %c0_39 = arith.constant 0 : index
    %42 = vector.load %arg3[%c2_37, %c1_38, %c0_39] : memref<6x17x8xbf16, #tpu.memory_space<vmem>>, vector<1x16x8xbf16>
    %43 = vector.shape_cast %42 : vector<1x16x8xbf16> to vector<16x8xbf16>
    %c8_40 = arith.constant 8 : index
    %c0_41 = arith.constant 0 : index
    %44 = vector.load %arg4[%c8_40, %c0_41] : memref<16x128xbf16, #tpu.memory_space<vmem>>, vector<8x128xbf16>
    %cst_42 = arith.constant dense<0.000000e+00> : vector<16x128xf32>
    %45 = tpu.matmul %43, %44, %cst_42 {dimension_numbers = #tpu.dot_dimension_numbers<[1], [0], [0], [1], [0, 0, 1, 1], [], []>} : vector<16x8xbf16>, vector<8x128xbf16>, vector<16x128xf32> -> vector<16x128xf32>
    %46 = arith.addf %41, %45 : vector<16x128xf32>
    %c0_43 = arith.constant 0 : index
    %c0_44 = arith.constant 0 : index
    %47 = vector.load %arg5[%c0_43, %c0_44] : memref<1x128xf32, #tpu.memory_space<vmem>>, vector<1x128xf32>
    %48 = vector.broadcast %47 : vector<1x128xf32> to vector<16x128xf32>
    %49 = arith.addf %46, %48 : vector<16x128xf32>
    %cst_45 = arith.constant 1.000000e-01 : f32
    %50 = vector.broadcast %cst_45 : f32 to vector<16x128xf32>
    %51 = arith.mulf %49, %50 : vector<16x128xf32>
    %52 = arith.maximumf %49, %51 : vector<16x128xf32>
    %53 = arith.truncf %52 : vector<16x128xf32> to vector<16x128xbf16>
    %c2_46 = arith.constant 2 : index
    %c0_47 = arith.constant 0 : index
    %c0_48 = arith.constant 0 : index
    %54 = vector.load %arg6[%c2_46, %c0_47, %c0_48] : memref<6x16x128xbf16, #tpu.memory_space<vmem>>, vector<1x16x128xbf16>
    %55 = vector.shape_cast %54 : vector<1x16x128xbf16> to vector<16x128xbf16>
    %56 = vector.shape_cast %53 : vector<16x128xbf16> to vector<1x16x128xbf16>
    tpu.vector_store %arg6[%c2_46, %c0_47, %c0_48], %56 {strides = array<i32>} : memref<6x16x128xbf16, #tpu.memory_space<vmem>>, vector<1x16x128xbf16>,
    %c3 = arith.constant 3 : index
    %c0_49 = arith.constant 0 : index
    %c0_50 = arith.constant 0 : index
    %57 = vector.load %arg3[%c3, %c0_49, %c0_50] : memref<6x17x8xbf16, #tpu.memory_space<vmem>>, vector<1x16x8xbf16>
    %58 = vector.shape_cast %57 : vector<1x16x8xbf16> to vector<16x8xbf16>
    %c0_51 = arith.constant 0 : index
    %c0_52 = arith.constant 0 : index
    %59 = vector.load %arg4[%c0_51, %c0_52] : memref<16x128xbf16, #tpu.memory_space<vmem>>, vector<8x128xbf16>
    %cst_53 = arith.constant dense<0.000000e+00> : vector<16x128xf32>
    %60 = tpu.matmul %58, %59, %cst_53 {dimension_numbers = #tpu.dot_dimension_numbers<[1], [0], [0], [1], [0, 0, 1, 1], [], []>} : vector<16x8xbf16>, vector<8x128xbf16>, vector<16x128xf32> -> vector<16x128xf32>
    %c3_54 = arith.constant 3 : index
    %c1_55 = arith.constant 1 : index
    %c0_56 = arith.constant 0 : index
    %61 = vector.load %arg3[%c3_54, %c1_55, %c0_56] : memref<6x17x8xbf16, #tpu.memory_space<vmem>>, vector<1x16x8xbf16>
    %62 = vector.shape_cast %61 : vector<1x16x8xbf16> to vector<16x8xbf16>
    %c8_57 = arith.constant 8 : index
    %c0_58 = arith.constant 0 : index
    %63 = vector.load %arg4[%c8_57, %c0_58] : memref<16x128xbf16, #tpu.memory_space<vmem>>, vector<8x128xbf16>
    %cst_59 = arith.constant dense<0.000000e+00> : vector<16x128xf32>
    %64 = tpu.matmul %62, %63, %cst_59 {dimension_numbers = #tpu.dot_dimension_numbers<[1], [0], [0], [1], [0, 0, 1, 1], [], []>} : vector<16x8xbf16>, vector<8x128xbf16>, vector<16x128xf32> -> vector<16x128xf32>
    %65 = arith.addf %60, %64 : vector<16x128xf32>
    %c0_60 = arith.constant 0 : index
    %c0_61 = arith.constant 0 : index
    %66 = vector.load %arg5[%c0_60, %c0_61] : memref<1x128xf32, #tpu.memory_space<vmem>>, vector<1x128xf32>
    %67 = vector.broadcast %66 : vector<1x128xf32> to vector<16x128xf32>
    %68 = arith.addf %65, %67 : vector<16x128xf32>
    %cst_62 = arith.constant 1.000000e-01 : f32
    %69 = vector.broadcast %cst_62 : f32 to vector<16x128xf32>
    %70 = arith.mulf %68, %69 : vector<16x128xf32>
    %71 = arith.maximumf %68, %70 : vector<16x128xf32>
    %72 = arith.truncf %71 : vector<16x128xf32> to vector<16x128xbf16>
    %c3_63 = arith.constant 3 : index
    %c0_64 = arith.constant 0 : index
    %c0_65 = arith.constant 0 : index
    %73 = vector.load %arg6[%c3_63, %c0_64, %c0_65] : memref<6x16x128xbf16, #tpu.memory_space<vmem>>, vector<1x16x128xbf16>
    %74 = vector.shape_cast %73 : vector<1x16x128xbf16> to vector<16x128xbf16>
    %75 = vector.shape_cast %72 : vector<16x128xbf16> to vector<1x16x128xbf16>
    tpu.vector_store %arg6[%c3_63, %c0_64, %c0_65], %75 {strides = array<i32>} : memref<6x16x128xbf16, #tpu.memory_space<vmem>>, vector<1x16x128xbf16>,
    %c4 = arith.constant 4 : index
    %c0_66 = arith.constant 0 : index
    %c0_67 = arith.constant 0 : index
    %76 = vector.load %arg3[%c4, %c0_66, %c0_67] : memref<6x17x8xbf16, #tpu.memory_space<vmem>>, vector<1x16x8xbf16>
    %77 = vector.shape_cast %76 : vector<1x16x8xbf16> to vector<16x8xbf16>
    %c0_68 = arith.constant 0 : index
    %c0_69 = arith.constant 0 : index
    %78 = vector.load %arg4[%c0_68, %c0_69] : memref<16x128xbf16, #tpu.memory_space<vmem>>, vector<8x128xbf16>
    %cst_70 = arith.constant dense<0.000000e+00> : vector<16x128xf32>
    %79 = tpu.matmul %77, %78, %cst_70 {dimension_numbers = #tpu.dot_dimension_numbers<[1], [0], [0], [1], [0, 0, 1, 1], [], []>} : vector<16x8xbf16>, vector<8x128xbf16>, vector<16x128xf32> -> vector<16x128xf32>
    %c4_71 = arith.constant 4 : index
    %c1_72 = arith.constant 1 : index
    %c0_73 = arith.constant 0 : index
    %80 = vector.load %arg3[%c4_71, %c1_72, %c0_73] : memref<6x17x8xbf16, #tpu.memory_space<vmem>>, vector<1x16x8xbf16>
    %81 = vector.shape_cast %80 : vector<1x16x8xbf16> to vector<16x8xbf16>
    %c8_74 = arith.constant 8 : index
    %c0_75 = arith.constant 0 : index
    %82 = vector.load %arg4[%c8_74, %c0_75] : memref<16x128xbf16, #tpu.memory_space<vmem>>, vector<8x128xbf16>
    %cst_76 = arith.constant dense<0.000000e+00> : vector<16x128xf32>
    %83 = tpu.matmul %81, %82, %cst_76 {dimension_numbers = #tpu.dot_dimension_numbers<[1], [0], [0], [1], [0, 0, 1, 1], [], []>} : vector<16x8xbf16>, vector<8x128xbf16>, vector<16x128xf32> -> vector<16x128xf32>
    %84 = arith.addf %79, %83 : vector<16x128xf32>
    %c0_77 = arith.constant 0 : index
    %c0_78 = arith.constant 0 : index
    %85 = vector.load %arg5[%c0_77, %c0_78] : memref<1x128xf32, #tpu.memory_space<vmem>>, vector<1x128xf32>
    %86 = vector.broadcast %85 : vector<1x128xf32> to vector<16x128xf32>
    %87 = arith.addf %84, %86 : vector<16x128xf32>
    %cst_79 = arith.constant 1.000000e-01 : f32
    %88 = vector.broadcast %cst_79 : f32 to vector<16x128xf32>
    %89 = arith.mulf %87, %88 : vector<16x128xf32>
    %90 = arith.maximumf %87, %89 : vector<16x128xf32>
    %91 = arith.truncf %90 : vector<16x128xf32> to vector<16x128xbf16>
    %c4_80 = arith.constant 4 : index
    %c0_81 = arith.constant 0 : index
    %c0_82 = arith.constant 0 : index
    %92 = vector.load %arg6[%c4_80, %c0_81, %c0_82] : memref<6x16x128xbf16, #tpu.memory_space<vmem>>, vector<1x16x128xbf16>
    %93 = vector.shape_cast %92 : vector<1x16x128xbf16> to vector<16x128xbf16>
    %94 = vector.shape_cast %91 : vector<16x128xbf16> to vector<1x16x128xbf16>
    tpu.vector_store %arg6[%c4_80, %c0_81, %c0_82], %94 {strides = array<i32>} : memref<6x16x128xbf16, #tpu.memory_space<vmem>>, vector<1x16x128xbf16>,
    %c5 = arith.constant 5 : index
    %c0_83 = arith.constant 0 : index
    %c0_84 = arith.constant 0 : index
    %95 = vector.load %arg3[%c5, %c0_83, %c0_84] : memref<6x17x8xbf16, #tpu.memory_space<vmem>>, vector<1x16x8xbf16>
    %96 = vector.shape_cast %95 : vector<1x16x8xbf16> to vector<16x8xbf16>
    %c0_85 = arith.constant 0 : index
    %c0_86 = arith.constant 0 : index
    %97 = vector.load %arg4[%c0_85, %c0_86] : memref<16x128xbf16, #tpu.memory_space<vmem>>, vector<8x128xbf16>
    %cst_87 = arith.constant dense<0.000000e+00> : vector<16x128xf32>
    %98 = tpu.matmul %96, %97, %cst_87 {dimension_numbers = #tpu.dot_dimension_numbers<[1], [0], [0], [1], [0, 0, 1, 1], [], []>} : vector<16x8xbf16>, vector<8x128xbf16>, vector<16x128xf32> -> vector<16x128xf32>
    %c5_88 = arith.constant 5 : index
    %c1_89 = arith.constant 1 : index
    %c0_90 = arith.constant 0 : index
    %99 = vector.load %arg3[%c5_88, %c1_89, %c0_90] : memref<6x17x8xbf16, #tpu.memory_space<vmem>>, vector<1x16x8xbf16>
    %100 = vector.shape_cast %99 : vector<1x16x8xbf16> to vector<16x8xbf16>
    %c8_91 = arith.constant 8 : index
    %c0_92 = arith.constant 0 : index
    %101 = vector.load %arg4[%c8_91, %c0_92] : memref<16x128xbf16, #tpu.memory_space<vmem>>, vector<8x128xbf16>
    %cst_93 = arith.constant dense<0.000000e+00> : vector<16x128xf32>
    %102 = tpu.matmul %100, %101, %cst_93 {dimension_numbers = #tpu.dot_dimension_numbers<[1], [0], [0], [1], [0, 0, 1, 1], [], []>} : vector<16x8xbf16>, vector<8x128xbf16>, vector<16x128xf32> -> vector<16x128xf32>
    %103 = arith.addf %98, %102 : vector<16x128xf32>
    %c0_94 = arith.constant 0 : index
    %c0_95 = arith.constant 0 : index
    %104 = vector.load %arg5[%c0_94, %c0_95] : memref<1x128xf32, #tpu.memory_space<vmem>>, vector<1x128xf32>
    %105 = vector.broadcast %104 : vector<1x128xf32> to vector<16x128xf32>
    %106 = arith.addf %103, %105 : vector<16x128xf32>
    %cst_96 = arith.constant 1.000000e-01 : f32
    %107 = vector.broadcast %cst_96 : f32 to vector<16x128xf32>
    %108 = arith.mulf %106, %107 : vector<16x128xf32>
    %109 = arith.maximumf %106, %108 : vector<16x128xf32>
    %110 = arith.truncf %109 : vector<16x128xf32> to vector<16x128xbf16>
    %c5_97 = arith.constant 5 : index
    %c0_98 = arith.constant 0 : index
    %c0_99 = arith.constant 0 : index
    %111 = vector.load %arg6[%c5_97, %c0_98, %c0_99] : memref<6x16x128xbf16, #tpu.memory_space<vmem>>, vector<1x16x128xbf16>
    %112 = vector.shape_cast %111 : vector<1x16x128xbf16> to vector<16x128xbf16>
    %113 = vector.shape_cast %110 : vector<16x128xbf16> to vector<1x16x128xbf16>
    tpu.vector_store %arg6[%c5_97, %c0_98, %c0_99], %113 {strides = array<i32>} : memref<6x16x128xbf16, #tpu.memory_space<vmem>>, vector<1x16x128xbf16>,
    return
  }
  func.func @transform_0(%arg0: i32, %arg1: i32, %arg2: i32) -> (i32, i32, i32) {
    %c0_i32 = arith.constant 0 : i32
    %c0_i32_0 = arith.constant 0 : i32
    %c0_i32_1 = arith.constant 0 : i32
    return %arg0, %c0_i32, %c0_i32_0 : i32, i32, i32
  }
  func.func @transform_1(%arg0: i32, %arg1: i32, %arg2: i32) -> (i32, i32) {
    %c0_i32 = arith.constant 0 : i32
    %c0_i32_0 = arith.constant 0 : i32
    return %c0_i32, %arg1 : i32, i32
  }
  func.func @transform_2(%arg0: i32, %arg1: i32, %arg2: i32) -> (i32, i32) {
    %c0_i32 = arith.constant 0 : i32
    %c0_i32_0 = arith.constant 0 : i32
    return %c0_i32, %arg1 : i32, i32
  }
  func.func @transform_3(%arg0: i32, %arg1: i32, %arg2: i32) -> (i32, i32, i32) {
    %c0_i32 = arith.constant 0 : i32
    return %arg0, %arg2, %arg1 : i32, i32, i32
  }
}

</mosaic_0001>

<bundles_post_ra>
// kernel: tpu_custom_call.1
= control target key start
LH: loop header
LB: loop body
LE: loop exit
PB: predicated region body
PF: predicated region fallthrough
CT: control target
= control target key end

     0   :  { %vm46_vm0 = vcmask 1043456   ;;  %vm42_vm1 = vcmask 64512   ;;  %vm29_vm2 = vsmask.f32 7424  ;;  %s783_s0 = inlined_call_operand.vmem [shape: bf16[6,17,8], index: 0, kind: input, shape index: {}]   ;;  %s784_s1 = inlined_call_operand.vmem [shape: bf16[16,128], index: 1, kind: input, shape index: {}]   ;;  %s785_s2 = inlined_call_operand.vmem [shape: f32[1,128], index: 2, kind: input, shape index: {}]   ;;  %s786_s3 = inlined_call_operand.hbm [shape: bf16[6,16,128], index: 3, kind: output, shape index: {}]  }
   0x1   :  { %v100_v0 = vld [vmem:[%s784_s1] sm:$0xf]  ;;  %v567_v4 = vld [vmem:[%s783_s0 + $0xc] sm:$0xff]  ;;  %v20_v5 = vld [vmem:[%s784_s1 + $0x4] sm:$0xf] }
   0x2   :  { %v18_v1 = vld [vmem:[%s784_s1] sm:$0xf]  ;;  %v146_v2 = vsel %vm46_vm0, %v100_v0, 0  ;;  %v48_v7 = vsel %vm46_vm0, %v20_v5, 0  ;;  %v102_v8 = vld [vmem:[%s784_s1 + $0x4] sm:$0xf] }
   0x3   :  { %v67_v3 = vsel %vm46_vm0, %v18_v1, 0  ;;  %v566_v6 = vld [vmem:[%s783_s0] sm:$0xff]  ;;  %155 = vmatpush.bf16.msra.mxu3 %v146_v2  ;;  %v19_v9 = vld [vmem:[%s783_s0 + $0x8] sm:$0x1]  ;;  %v114_v10 = vshll.u32 %v567_v4, 16  ;;  %57 = vmatpush.bf16.msra.mxu0 %v48_v7  ;;  %v127_v11 = vsel %vm46_vm0, %v102_v8, 0 }
   0x4   :  { %76 = vmatpush.bf16.msra.mxu1 %v67_v3  ;;  %v33_v12 = vshll.u32 %v566_v6, 16  ;;  %v26_v13 = vunpack.c.l.b16 %v19_v9  ;;  %v523_v14 = vld [vmem:[%s783_s0 + $0x14] sm:$0x1]  ;;  %136 = vmatpush.bf16.msra.mxu2 %v127_v11  ;;  %v31_v15 = vshrl.u32 %v566_v6, 16  ;;  %v112_v17 = vshrl.u32 %v567_v4, 16  ;;  %v568_v38 = vld [vmem:[%s783_s0 + $0x18] sm:$0xff] }
   0x5   :  { %v108_v16 = vunpack.c.l.b16 %v523_v14  ;;  %v262_v18 = vld [vmem:[%s784_s1 + $0x4] sm:$0xf]  ;;  %v116_v21 = vrot.slane %v114_v10, 1  ;;  %v260_v23 = vld [vmem:[%s784_s1] sm:$0xf]  ;;  %v194_v52 = vshll.u32 %v568_v38, 16 }
   0x6   :  { %529 = vmatmul.msk.bf16.vlgmr.msra.gmra.mxu3 %vm42_vm1, %v567_v4  ;;  %v28_v19 = vpack.c.b16 %v26_v13, %v26_v13  ;;  %v35_v20 = vrot.slane %v33_v12, 1  ;;  %v287_v22 = vsel %vm46_vm0, %v262_v18, 0  ;;  %v306_v25 = vsel %vm46_vm0, %v260_v23, 0  ;;  %v182_v26 = vld [vmem:[%s784_s1 + $0x4] sm:$0xf] }
   0x7   :  { %520 = vmatmul.msk.bf16.vlgmr.msra.gmra.mxu1 %vm42_vm1, %v566_v6  ;;  %v110_v24 = vpack.c.b16 %v108_v16, %v108_v16  ;;  %v180_v27 = vld [vmem:[%s784_s1] sm:$0xf]  ;;  %315 = vmatpush.bf16.msrb.mxu3 %v306_v25  ;;  %v207_v30 = vsel %vm46_vm0, %v182_v26, 0  ;;  %v541_v32 = vld [vmem:[%s783_s0 + $0x2c] sm:$0x1]  ;;  %v117_v33 = vor.u32 %v116_v21, %v112_v17  ;;  %v569_v42 = vld [vmem:[%s783_s0 + $0x24] sm:$0xff] }
   0x8   :  { %296 = vmatpush.bf16.msrb.mxu2 %v287_v22  ;;  %v36_v28 = vor.u32 %v35_v20, %v31_v15  ;;  %v38_v29 = vshll.u32 %v28_v19, 16  ;;  %v532_v31 = vld [vmem:[%s783_s0 + $0x20] sm:$0x1]  ;;  %216 = vmatpush.bf16.msrb.mxu0 %v207_v30  ;;  %v226_v35 = vsel %vm46_vm0, %v180_v27, 0  ;;  %v422_v36 = vld [vmem:[%s784_s1 + $0x4] sm:$0xf]  ;;  %v268_v43 = vunpack.c.l.b16 %v541_v32 }
   0x9   :  { %v119_v34 = vshll.u32 %v110_v24, 16  ;;  %235 = vmatpush.bf16.msrb.mxu1 %v226_v35  ;;  %v188_v39 = vunpack.c.l.b16 %v532_v31  ;;  %v420_v40 = vld [vmem:[%s784_s1] sm:$0xf]  ;;  %v342_v44 = vld [vmem:[%s784_s1 + $0x4] sm:$0xf]  ;;  %v447_v46 = vsel %vm46_vm0, %v422_v36, 0 }
   0xa   :  { %v40_v37 = vrot.slane %v38_v29, 1  ;;  %v466_v47 = vsel %vm46_vm0, %v420_v40, 0  ;;  %v340_v48 = vld [vmem:[%s784_s1] sm:$0xf]  ;;  %v367_v50 = vsel %vm46_vm0, %v342_v44, 0  ;;  %v270_v54 = vpack.c.b16 %v268_v43, %v268_v43 }
   0xb   :  { %v121_v41 = vrot.slane %v119_v34, 1  ;;  %475 = vmatpush.bf16.msra.mxu3 %v466_v47  ;;  %v190_v51 = vpack.c.b16 %v188_v39, %v188_v39  ;;  %v386_v53 = vsel %vm46_vm0, %v340_v48, 0  ;;  %v274_v55 = vshll.u32 %v569_v42, 16 }
   0xc   :  { %v41_v45 = vsel %vm29_vm2, %v36_v28, %v40_v37 }
   0xd   :  { %519 = vmatmul.msk.bf16.vlgmr.msra.gmra.mxu0 %vm42_vm1, %v41_v45  ;;  %v122_v49 = vsel %vm29_vm2, %v117_v33, %v121_v41  ;;  %395 = vmatpush.bf16.msra.mxu1 %v386_v53 }
   0xe   :  { %528 = vmatmul.msk.bf16.vlgmr.msra.gmra.mxu2 %vm42_vm1, %v122_v49  ;;  %376 = vmatpush.bf16.msra.mxu0 %v367_v50 }
   0xf   :  { %456 = vmatpush.bf16.msra.mxu2 %v447_v46 }
  0x10   :  { %8 = vsyncpa [#allocation3], 0  ;;  %v192_v56 = vshrl.u32 %v568_v38, 16  ;;  %v196_v57 = vrot.slane %v194_v52, 1  ;;  %v199_v58 = vshll.u32 %v190_v51, 16  ;;  %v272_v59 = vshrl.u32 %v569_v42, 16 }
  0x11   :  { %v276_v60 = vrot.slane %v274_v55, 1  ;;  %v279_v61 = vshll.u32 %v270_v54, 16  ;;  %v550_v2 = vld [vmem:[%s783_s0 + $0x38] sm:$0x1]  ;;  %v559_v3 = vld [vmem:[%s783_s0 + $0x44] sm:$0x1] }
  0x12   :  { %v197_v62 = vor.u32 %v196_v57, %v192_v56  ;;  %v201_v63 = vrot.slane %v199_v58, 1  ;;  %v570_v5 = vld [vmem:[%s783_s0 + $0x30] sm:$0xff]  ;;  %v348_v6 = vunpack.c.l.b16 %v550_v2  ;;  %v571_v8 = vld [vmem:[%s783_s0 + $0x3c] sm:$0xff]  ;;  %v428_v9 = vunpack.c.l.b16 %v559_v3  ;;  %s637_s16 = smov [#allocation2]   ;;  %s638_s20 = smov 64  }
  0x13   :  { %v277_v0 = vor.u32 %v276_v60, %v272_v59  ;;  %v281_v1 = vrot.slane %v279_v61, 1  ;;  %v354_v11 = vshll.u32 %v570_v5, 16  ;;  %v434_v13 = vshll.u32 %v571_v8, 16  ;;  %v605_v31 = vld [vmem:[%s785_s2] ss:$0 sm:$0xff]  ;;  %s501_s17 = sshll.u32 %s637_s16, 4  ;;  %s502_s17 = int_to_ptr.vmem [resolvable:$true] %s501_s17 }
  0x14   :  { %v202_v4 = vsel %vm29_vm2, %v197_v62, %v201_v63  ;;  %v350_v10 = vpack.c.b16 %v348_v6, %v348_v6  ;;  %v430_v12 = vpack.c.b16 %v428_v9, %v428_v9  ;;  %v352_v14 = vshrl.u32 %v570_v5, 16  ;;  %v607_v54 = vld [vmem:[%s785_s2] ss:$0 sm:$0xff]  ;;  %s639_s21 = smov 4  }
  0x15   :  { %v282_v7 = vsel %vm29_vm2, %v277_v0, %v281_v1  ;;  %v356_v15 = vrot.slane %v354_v11, 1  ;;  %v432_v17 = vshrl.u32 %v571_v8, 16  ;;  %v436_v18 = vrot.slane %v434_v13, 1  ;;  %v608_v1 = vld [vmem:[%s785_s2] ss:$0 sm:$0xff] }
  0x16   :  { %547 = vmatmul.msk.bf16.vlgmr.msrb.gmra.mxu3 %vm42_vm1, %v569_v42  ;;  %v359_v16 = vshll.u32 %v350_v10, 16  ;;  %v439_v19 = vshll.u32 %v430_v12, 16 }
  0x17   :  { %538 = vmatmul.msk.bf16.vlgmr.msrb.gmra.mxu1 %vm42_vm1, %v568_v38  ;;  %v357_v20 = vor.u32 %v356_v15, %v352_v14  ;;  %v437_v22 = vor.u32 %v436_v18, %v432_v17  ;;  %v606_v38 = vld [vmem:[%s785_s2] ss:$0 sm:$0xff] }
  0x18   :  { %v361_v21 = vrot.slane %v359_v16, 1  ;;  %v441_v23 = vrot.slane %v439_v19, 1  ;;  %v609_v17 = vld [vmem:[%s785_s2] ss:$0 sm:$0xff] }
  0x1a   :  { %v362_v24 = vsel %vm29_vm2, %v357_v20, %v361_v21  ;;  %v442_v25 = vsel %vm29_vm2, %v437_v22, %v441_v23 }
  0x1d   :  { %537 = vmatmul.msk.bf16.vlgmr.msrb.gmra.mxu0 %vm42_vm1, %v202_v4 }
  0x1e   :  { %546 = vmatmul.msk.bf16.vlgmr.msrb.gmra.mxu2 %vm42_vm1, %v282_v7 }
  0x26   :  { %565 = vmatmul.msk.bf16.vlgmr.msra.gmra.mxu3 %vm42_vm1, %v571_v8 }
  0x27   :  { %556 = vmatmul.msk.bf16.vlgmr.msra.gmra.mxu1 %vm42_vm1, %v570_v5 }
  0x2d   :  { %555 = vmatmul.msk.bf16.vlgmr.msra.gmra.mxu0 %vm42_vm1, %v362_v24 }
  0x2e   :  { %564 = vmatmul.msk.bf16.vlgmr.msra.gmra.mxu2 %vm42_vm1, %v442_v25 }
  0x84   :  { %v78_v26 = vpop.f32.mrf.mxu1 }
  0x89   :  { %v157_v27 = vpop.f32.mrf.mxu3 }
  0x8a   :  { %v59_v28 = vpop.f32.mrf.mxu0 }
  0x8b   :  { %v79_v30 = vadd.f32 %v78_v26, %v59_v28 }
  0x8c   :  { %v80_v29 = vpop.f32.mrf.mxu1 }
  0x8d   :  { %v87_v32 = vadd.f32 %v605_v31, %v79_v30 }
  0x8f   :  { %v89_v40 = vmul.f32 0.1, %v87_v32 }
  0x91   :  { %v138_v33 = vpop.f32.mrf.mxu2  ;;  %v159_v34 = vpop.f32.mrf.mxu3  ;;  %v91_v44 = vmax.f32 %v87_v32, %v89_v40 }
  0x92   :  { %v61_v35 = vpop.f32.mrf.mxu0  ;;  %v158_v37 = vadd.f32 %v157_v27, %v138_v33 }
  0x93   :  { %v81_v36 = vadd.f32 %v80_v29, %v61_v35  ;;  %v610_v29 = vld [vmem:[%s785_s2] ss:$0 sm:$0xff]  ;;  %s503_s2 = sshll.u32 %s786_s3, 4  ;;  %s504_s2 = int_to_ptr.hbm [resolvable:$true] %s503_s2 }
  0x94   :  { %v237_v39 = vpop.f32.mrf.mxu1  ;;  %v166_v43 = vadd.f32 %v606_v38, %v158_v37 }
  0x95   :  { %v88_v41 = vadd.f32 %v605_v31, %v81_v36 }
  0x96   :  { %v168_v51 = vmul.f32 0.1, %v166_v43 }
  0x97   :  { %v90_v42 = vmul.f32 0.1, %v88_v41 }
  0x98   :  { %v170_v57 = vmax.f32 %v166_v43, %v168_v51 }
  0x99   :  { %v92_v45 = vmax.f32 %v88_v41, %v90_v42  ;;  %v140_v46 = vpop.f32.mrf.mxu2  ;;  %v317_v50 = vpop.f32.mrf.mxu3 }
  0x9a   :  { %v160_v47 = vadd.f32 %v159_v34, %v140_v46  ;;  %v218_v48 = vpop.f32.mrf.mxu0 }
  0x9b   :  { %v575_v49 = vpack.c.bf16 %v92_v45, %v91_v44  ;;  %v238_v53 = vadd.f32 %v237_v39, %v218_v48 }
  0x9c   :  { %v167_v52 = vadd.f32 %v606_v38, %v160_v47  ;;  %v239_v56 = vpop.f32.mrf.mxu1 }
  0x9d   :  { %576 = vst [vmem:[#allocation2] sm:$0xff] %v575_v49   ;;  %v246_v59 = vadd.f32 %v607_v54, %v238_v53 }
  0x9e   :  { %v169_v55 = vmul.f32 0.1, %v167_v52 }
  0x9f   :  { %v248_v2 = vmul.f32 0.1, %v246_v59 }
  0xa0   :  { %v171_v58 = vmax.f32 %v167_v52, %v169_v55 }
  0xa1   :  { %v298_v60 = vpop.f32.mrf.mxu2  ;;  %v319_v4 = vpop.f32.mrf.mxu3  ;;  %v250_v8 = vmax.f32 %v246_v59, %v248_v2 }
  0xa2   :  { %v580_v61 = vpack.c.bf16 %v171_v58, %v170_v57  ;;  %v220_v62 = vpop.f32.mrf.mxu0  ;;  %v318_v0 = vadd.f32 %v317_v50, %v298_v60 }
  0xa3   :  { %v240_v63 = vadd.f32 %v239_v56, %v220_v62 }
  0xa4   :  { %581 = vst [vmem:[#allocation2 + $0x8] sm:$0xff] %v580_v61   ;;  %v326_v6 = vadd.f32 %v608_v1, %v318_v0  ;;  %v397_v7 = vpop.f32.mrf.mxu1 }
  0xa5   :  { %v247_v3 = vadd.f32 %v607_v54, %v240_v63 }
  0xa6   :  { %v328_v14 = vmul.f32 0.1, %v326_v6 }
  0xa7   :  { %v249_v5 = vmul.f32 0.1, %v247_v3 }
  0xa8   :  { %v330_v20 = vmax.f32 %v326_v6, %v328_v14 }
  0xa9   :  { %v251_v9 = vmax.f32 %v247_v3, %v249_v5  ;;  %v300_v10 = vpop.f32.mrf.mxu2  ;;  %v477_v19 = vpop.f32.mrf.mxu3 }
  0xaa   :  { %v320_v11 = vadd.f32 %v319_v4, %v300_v10  ;;  %v378_v12 = vpop.f32.mrf.mxu0 }
  0xab   :  { %v585_v13 = vpack.c.bf16 %v251_v9, %v250_v8  ;;  %v398_v16 = vadd.f32 %v397_v7, %v378_v12 }
  0xac   :  { %v327_v15 = vadd.f32 %v608_v1, %v320_v11  ;;  %v399_v25 = vpop.f32.mrf.mxu1 }
  0xad   :  { %586 = vst [vmem:[#allocation2 + $0x10] sm:$0xff] %v585_v13   ;;  %v406_v22 = vadd.f32 %v609_v17, %v398_v16 }
  0xae   :  { %v329_v18 = vmul.f32 0.1, %v327_v15 }
  0xaf   :  { %v408_v30 = vmul.f32 0.1, %v406_v22 }
  0xb0   :  { %v331_v21 = vmax.f32 %v327_v15, %v329_v18 }
  0xb1   :  { %v458_v23 = vpop.f32.mrf.mxu2  ;;  %v410_v34 = vmax.f32 %v406_v22, %v408_v30  ;;  %v479_v36 = vpop.f32.mrf.mxu3 }
  0xb2   :  { %v590_v24 = vpack.c.bf16 %v331_v21, %v330_v20  ;;  %v380_v26 = vpop.f32.mrf.mxu0  ;;  %v478_v28 = vadd.f32 %v477_v19, %v458_v23 }
  0xb3   :  { %v400_v27 = vadd.f32 %v399_v25, %v380_v26 }
  0xb4   :  { %591 = vst [vmem:[#allocation2 + $0x18] sm:$0xff] %v590_v24   ;;  %v486_v33 = vadd.f32 %v610_v29, %v478_v28 }
  0xb5   :  { %v407_v31 = vadd.f32 %v609_v17, %v400_v27 }
  0xb6   :  { %v488_v40 = vmul.f32 0.1, %v486_v33 }
  0xb7   :  { %v409_v32 = vmul.f32 0.1, %v407_v31 }
  0xb8   :  { %v490_v43 = vmax.f32 %v486_v33, %v488_v40 }
  0xb9   :  { %v411_v35 = vmax.f32 %v407_v31, %v409_v32  ;;  %v460_v37 = vpop.f32.mrf.mxu2 }
  0xba   :  { %v480_v38 = vadd.f32 %v479_v36, %v460_v37 }
  0xbb   :  { %v595_v39 = vpack.c.bf16 %v411_v35, %v410_v34 }
  0xbc   :  { %v487_v41 = vadd.f32 %v610_v29, %v480_v38 }
  0xbd   :  { %596 = vst [vmem:[#allocation2 + $0x20] sm:$0xff] %v595_v39  }
  0xbe   :  { %v489_v42 = vmul.f32 0.1, %v487_v41 }
  0xc0   :  { %v491_v44 = vmax.f32 %v487_v41, %v489_v42 }
  0xc2   :  { %v600_v45 = vpack.c.bf16 %v491_v44, %v490_v43 }
  0xc4   :  { %601 = vst [vmem:[#allocation2 + $0x28] sm:$0xff] %v600_v45  }
  0xc5   :  { %509 = dma.vmem_to_hbm [thread:$0]  %s502_s17, 768, %s504_s2, [#allocation3], %s638_s20, %s638_s20, %s639_s21  }
  0xc6   :  { %635 = dma.done.wait [#allocation3], 768  }
  0xc7   :  { %636 = vsyncadd [#allocation3], 4294966528 }
  0xc8   :  { %514 = vsyncpa [#allocation3], 1 }

</bundles_post_ra>
